<compile_context>
chip_gen: v5e
topology: v5e:2x2
jax: 0.10.0
libtpu: 0.0.40
codegen_flags: <defaults>
</compile_context>

<pallas_src>
import jax
import jax.numpy as jnp
from jax import lax
from jax.experimental import pallas as pl
from jax.experimental.pallas import tpu as pltpu
import numpy as np


def make_middle_stack(w1_oihw, b1, w2_oihw, b2, image_hw):
    """Build a jitted forward(x_nchw) with all weight/mask prep hoisted.

    w1: (Cmid, Cin, 3, 3), w2: (Cout, Cmid, 3, 3), biases 1-D (PyTorch OIHW).
    """
    H, W = image_hw
    Cmid, Cin = w1_oihw.shape[0], w1_oihw.shape[1]
    Cout = w2_oihw.shape[0]
    assert w1_oihw.shape[2:] == (3, 3) and w2_oihw.shape[2:] == (3, 3)

    f32 = jnp.float32
    HW = H * W
    C8 = max(8, -(-max(Cin, Cmid, Cout) // 8) * 8)   # channels -> sublane tile
    KPAD = -(-9 * C8 // 128) * 128                   # stacked-tap contraction depth
    ZROWS = KPAD - 9 * C8

    # Flattened-spatial layout: flat index = BASE + h*W + w, with one zero row
    # above/below and PAD_F/PAD_B extra zero lanes so every 3x3 tap is a
    # static, in-bounds lane slice.  BASE is a multiple of 128 (aligned,
    # unmasked interior store for the intermediate scratch).
    PAD_F = (-W) % 128
    if PAD_F == 0:
        PAD_F = 128
    BASE = PAD_F + W
    data_len = (H + 2) * W
    L = -(-(BASE + HW + W + 1) // 128) * 128
    PAD_B = L - PAD_F - data_len

    # ---- one-time param prep (hoisted out of the per-call path) ----
    def prep_w(w, co, ci, dtype):
        wp = jnp.pad(w, ((0, C8 - co), (0, C8 - ci), (0, 0), (0, 0)))
        # Wf[o, t*C8 + i] = w[o, i, kh, kw], t = kh*3 + kw  (tap-major columns)
        wf = jnp.transpose(wp, (0, 2, 3, 1)).reshape(C8, 9 * C8)
        return jnp.pad(wf, ((0, 0), (0, KPAD - 9 * C8))).astype(dtype)

    w1s = prep_w(w1_oihw, Cmid, Cin, jnp.bfloat16)   # conv1: bf16 MXU operands
    w2s = prep_w(w2_oihw, Cout, Cmid, f32)           # conv2: keep f32 precision
    b1c = jnp.pad(b1, (0, C8 - Cmid)).astype(f32).reshape(C8, 1)
    b2c = jnp.pad(b2, (0, C8 - Cout)).astype(f32).reshape(C8, 1)

    # Column-wrap masks for the dw = -1 / +1 taps (constant, VMEM resident).
    col = jnp.arange(HW, dtype=jnp.int32) % W
    masks = jnp.stack([
        jnp.broadcast_to((col >= 1).astype(f32), (C8, HW)),       # dw = -1
        jnp.broadcast_to((col <= W - 2).astype(f32), (C8, HW)),   # dw = +1
    ])                                                            # (2, C8, HW)

    # ---- the kernel ----
    def kernel(x_ref, w1_ref, b1_ref, w2_ref, b2_ref, mask_ref, o_ref, mid_ref):
        # x_ref : (1, C8, L)   padded-flat input slab (one batch element), f32
        # w*_ref: (C8, KPAD)   lane-dense stacked-tap weights (w1 bf16, w2 f32)
        # b*_ref: (C8, 1)      bias columns, f32
        # mask  : (2, C8, HW)  column-wrap masks, f32
        # o_ref : (1, C8, HW)  lane-dense output slab
        # mid   : (C8, L)      padded-flat conv1 activation (f32 VMEM scratch)
        x = x_ref[0]                                  # (C8, L)
        mask_m1 = mask_ref[0]                         # zero where w == 0
        mask_p1 = mask_ref[1]                         # zero where w == W-1

        def build_slab(src):
            # Stack the 9 shifted 3x3 patches along sublanes -> (KPAD, HW).
            rows = []
            for dh in (-1, 0, 1):
                for dw in (-1, 0, 1):
                    start = BASE + dh * W + dw
                    patch = src[:, start:start + HW]  # static lane slice
                    if dw == -1:
                        patch = patch * mask_m1
                    elif dw == 1:
                        patch = patch * mask_p1
                    rows.append(patch)
            if ZROWS:
                rows.append(jnp.zeros((ZROWS, HW), f32))
            return jnp.concatenate(rows, axis=0)      # (KPAD, HW), f32

        # ---- conv1 + bias + ReLU : single bf16 MXU pass, f32 accumulation ----
        slab1 = build_slab(x).astype(jnp.bfloat16)
        act1 = jnp.dot(w1_ref[...], slab1, preferred_element_type=f32)
        act1 = jnp.maximum(act1 + b1_ref[...], 0.0)   # (C8, HW)

        # Zero-haloed flat intermediate: re-zero only the halo tiles, aligned
        # (unmasked) interior store, single full reload.
        mid_ref[:, :BASE] = jnp.zeros((C8, BASE), f32)
        mid_ref[:, BASE + HW:] = jnp.zeros((C8, L - BASE - HW), f32)
        mid_ref[:, BASE:BASE + HW] = act1
        mid = mid_ref[...]                            # (C8, L)

        # ---- conv2 + bias + ReLU : single f32 dot (act1 is f32) ----
        slab2 = build_slab(mid)
        out = jnp.dot(w2_ref[...], slab2, preferred_element_type=f32)
        out = jnp.maximum(out + b2_ref[...], 0.0)     # (C8, HW)
        o_ref[0] = out.astype(o_ref.dtype)

    # ---- forward wrapper (layout plumbing only) ----
    def forward(x_nchw, w1a, b1a, w2a, b2a, ma):
        N = x_nchw.shape[0]
        if PAD_F % W == 0 and PAD_B % W == 0:
            # Single pad: lane padding is whole image rows.
            xp = jnp.pad(x_nchw, ((0, 0), (0, C8 - Cin),
                                  (1 + PAD_F // W, 1 + PAD_B // W), (0, 0)))
            x_flat = xp.reshape(N, C8, L)
        else:
            xp = jnp.pad(x_nchw, ((0, 0), (0, C8 - Cin), (1, 1), (0, 0)))
            x_flat = jnp.pad(xp.reshape(N, C8, data_len),
                             ((0, 0), (0, 0), (PAD_F, PAD_B)))

        out_flat = pl.pallas_call(
            kernel,
            out_shape=jax.ShapeDtypeStruct((N, C8, HW), x_nchw.dtype),
            grid_spec=pltpu.PrefetchScalarGridSpec(
                num_scalar_prefetch=0,
                grid=(N,),
                in_specs=[
                    pl.BlockSpec((1, C8, L), lambda n: (n, 0, 0)),
                    pl.BlockSpec((C8, KPAD), lambda n: (0, 0)),
                    pl.BlockSpec((C8, 1), lambda n: (0, 0)),
                    pl.BlockSpec((C8, KPAD), lambda n: (0, 0)),
                    pl.BlockSpec((C8, 1), lambda n: (0, 0)),
                    pl.BlockSpec((2, C8, HW), lambda n: (0, 0, 0)),
                ],
                out_specs=pl.BlockSpec((1, C8, HW), lambda n: (n, 0, 0)),
                scratch_shapes=[pltpu.VMEM((C8, L), f32)],
            ),
            compiler_params=pltpu.CompilerParams(
                dimension_semantics=("parallel",)),   # one batch elem / TC on v7x
        )(x_flat, w1a, b1a, w2a, b2a, ma)

        # Drop zero-padded channels, restore NCHW spatial shape (free reshape).
        return out_flat[:, :Cout, :].reshape(N, Cout, H, W)

    fwd = jax.jit(forward)

    def run(x_nchw):
        return fwd(x_nchw, w1s, b1c, w2s, b2c, masks)

    return run


def middle_stack_pallas(x_nchw, w1, b1, w2, b2):
    """One-shot convenience wrapper (prep + apply)."""
    return make_middle_stack(w1, b1, w2, b2, image_hw=x_nchw.shape[2:])(x_nchw)


def middle_stack_ref(x_nchw, w1, b1, w2, b2):
    """Pure-JAX reference (matches PyTorch default forward path, NCHW/OIHW)."""
    dn = ("NCHW", "OIHW", "NCHW")
    y = lax.conv_general_dilated(x_nchw, w1, (1, 1), "SAME",
                                 dimension_numbers=dn)
    y = jnp.maximum(y + b1.reshape(1, -1, 1, 1), 0.0)
    z = lax.conv_general_dilated(y, w2, (1, 1), "SAME",
                                 dimension_numbers=dn)
    return jnp.maximum(z + b2.reshape(1, -1, 1, 1), 0.0)


if __name__ == "__main__":
    # Module config: channels=4  =>  conv1: 2 -> 4, conv2: 4 -> 2.
    channels = 4
    cin = channels // 2      # 2
    cmid = channels          # 4
    cout = channels // 2     # 2
    N, H, W = 2, 16, 16

    key = jax.random.PRNGKey(0)
    kx, kw1, kb1, kw2, kb2 = jax.random.split(key, 5)

    def bf16_exact(a):
        # Round test data to bf16-representable values so the comparison is
        # insensitive to MXU / XLA conv pass-count (precision) choices.
        return a.astype(jnp.bfloat16).astype(jnp.float32)

    # PyTorch conventions: NCHW input, OIHW weights.
    x_nchw = bf16_exact(jax.random.normal(kx, (N, cin, H, W), dtype=jnp.float32))
    w1 = bf16_exact(jax.random.normal(kw1, (cmid, cin, 3, 3), jnp.float32) * 0.2)
    b1 = bf16_exact(jax.random.normal(kb1, (cmid,), jnp.float32) * 0.1)
    w2 = bf16_exact(jax.random.normal(kw2, (cout, cmid, 3, 3), jnp.float32) * 0.2)
    b2 = bf16_exact(jax.random.normal(kb2, (cout,), jnp.float32) * 0.1)

    forward = make_middle_stack(w1, b1, w2, b2, image_hw=(H, W))  # prep hoisted
    out = jax.block_until_ready(forward(x_nchw))
    ref = jax.block_until_ready(middle_stack_ref(x_nchw, w1, b1, w2, b2))

    assert out.shape == (N, cout, H, W), out.shape
    np.testing.assert_allclose(np.asarray(out), np.asarray(ref),
                               rtol=1e-4, atol=1e-4)
    print("KERNEL_OK")
</pallas_src>

<mosaic_0001>
module attributes {stable_mosaic.version = 11 : i64} {
  func.func @kernel(%arg0: i32, %arg1: memref<1x8x512xf32, #tpu.memory_space<vmem>>, %arg2: memref<8x128xbf16, #tpu.memory_space<vmem>>, %arg3: memref<8x1xf32, #tpu.memory_space<vmem>>, %arg4: memref<8x128xf32, #tpu.memory_space<vmem>>, %arg5: memref<8x1xf32, #tpu.memory_space<vmem>>, %arg6: memref<2x8x256xf32, #tpu.memory_space<vmem>>, %arg7: memref<1x8x256xf32, #tpu.memory_space<vmem>>, %arg8: memref<8x512xf32, #tpu.memory_space<vmem>>) attributes {dimension_semantics = [#tpu.dimension_semantics<parallel>], iteration_bounds = array<i64: 2>, scalar_prefetch = 0 : i64, scratch_operands = 1 : i64, tpu.core_type = #tpu.core_type<tc>, window_params = [{transform_indices = @transform_0, window_bounds = array<i64: 1, 8, 512>}, {pipeline_mode = #tpu.pipeline_mode<synchronous>, transform_indices = @transform_1, window_bounds = array<i64: 8, 128>}, {pipeline_mode = #tpu.pipeline_mode<synchronous>, transform_indices = @transform_2, window_bounds = array<i64: 8, 1>}, {pipeline_mode = #tpu.pipeline_mode<synchronous>, transform_indices = @transform_3, window_bounds = array<i64: 8, 128>}, {pipeline_mode = #tpu.pipeline_mode<synchronous>, transform_indices = @transform_4, window_bounds = array<i64: 8, 1>}, {pipeline_mode = #tpu.pipeline_mode<synchronous>, transform_indices = @transform_5, window_bounds = array<i64: 2, 8, 256>}, {transform_indices = @transform_6, window_bounds = array<i64: 1, 8, 256>}]} {
    %c0 = arith.constant 0 : index
    %c0_0 = arith.constant 0 : index
    %c0_1 = arith.constant 0 : index
    %0 = vector.load %arg1[%c0, %c0_0, %c0_1] : memref<1x8x512xf32, #tpu.memory_space<vmem>>, vector<1x8x512xf32>
    %1 = vector.shape_cast %0 : vector<1x8x512xf32> to vector<8x512xf32>
    %c0_2 = arith.constant 0 : index
    %c0_3 = arith.constant 0 : index
    %c0_4 = arith.constant 0 : index
    %2 = vector.load %arg6[%c0_2, %c0_3, %c0_4] : memref<2x8x256xf32, #tpu.memory_space<vmem>>, vector<1x8x256xf32>
    %3 = vector.shape_cast %2 : vector<1x8x256xf32> to vector<8x256xf32>
    %c1 = arith.constant 1 : index
    %c0_5 = arith.constant 0 : index
    %c0_6 = arith.constant 0 : index
    %4 = vector.load %arg6[%c1, %c0_5, %c0_6] : memref<2x8x256xf32, #tpu.memory_space<vmem>>, vector<1x8x256xf32>
    %5 = vector.shape_cast %4 : vector<1x8x256xf32> to vector<8x256xf32>
    %6 = vector.extract_strided_slice %1 {offsets = [0, 111], sizes = [8, 256], strides = [1, 1]} : vector<8x512xf32> to vector<8x256xf32>
    %7 = arith.mulf %6, %3 : vector<8x256xf32>
    %8 = vector.extract_strided_slice %1 {offsets = [0, 112], sizes = [8, 256], strides = [1, 1]} : vector<8x512xf32> to vector<8x256xf32>
    %9 = vector.extract_strided_slice %1 {offsets = [0, 113], sizes = [8, 256], strides = [1, 1]} : vector<8x512xf32> to vector<8x256xf32>
    %10 = arith.mulf %9, %5 : vector<8x256xf32>
    %11 = vector.extract_strided_slice %1 {offsets = [0, 127], sizes = [8, 256], strides = [1, 1]} : vector<8x512xf32> to vector<8x256xf32>
    %12 = arith.mulf %11, %3 : vector<8x256xf32>
    %13 = vector.extract_strided_slice %1 {offsets = [0, 128], sizes = [8, 256], strides = [1, 1]} : vector<8x512xf32> to vector<8x256xf32>
    %14 = vector.extract_strided_slice %1 {offsets = [0, 129], sizes = [8, 256], strides = [1, 1]} : vector<8x512xf32> to vector<8x256xf32>
    %15 = arith.mulf %14, %5 : vector<8x256xf32>
    %16 = vector.extract_strided_slice %1 {offsets = [0, 143], sizes = [8, 256], strides = [1, 1]} : vector<8x512xf32> to vector<8x256xf32>
    %17 = arith.mulf %16, %3 : vector<8x256xf32>
    %18 = vector.extract_strided_slice %1 {offsets = [0, 144], sizes = [8, 256], strides = [1, 1]} : vector<8x512xf32> to vector<8x256xf32>
    %19 = vector.extract_strided_slice %1 {offsets = [0, 145], sizes = [8, 256], strides = [1, 1]} : vector<8x512xf32> to vector<8x256xf32>
    %20 = arith.mulf %19, %5 : vector<8x256xf32>
    %cst = arith.constant 0.000000e+00 : f32
    %21 = vector.broadcast %cst : f32 to vector<56x256xf32>
    %22 = tpu.concatenate %7, %8, %10, %12, %13, %15, %17, %18, %20, %21 in 0 : vector<8x256xf32>, vector<8x256xf32>, vector<8x256xf32>, vector<8x256xf32>, vector<8x256xf32>, vector<8x256xf32>, vector<8x256xf32>, vector<8x256xf32>, vector<8x256xf32>, vector<56x256xf32> -> vector<128x256xf32>
    %23 = arith.truncf %22 : vector<128x256xf32> to vector<128x256xbf16>
    %c0_7 = arith.constant 0 : index
    %c0_8 = arith.constant 0 : index
    %24 = vector.load %arg2[%c0_7, %c0_8] : memref<8x128xbf16, #tpu.memory_space<vmem>>, vector<8x128xbf16>
    %cst_9 = arith.constant dense<0.000000e+00> : vector<8x256xf32>
    %25 = tpu.matmul %24, %23, %cst_9 {dimension_numbers = #tpu.dot_dimension_numbers<[1], [0], [0], [1], [0, 0, 1, 1], [], []>} : vector<8x128xbf16>, vector<128x256xbf16>, vector<8x256xf32> -> vector<8x256xf32>
    %c0_10 = arith.constant 0 : index
    %c0_11 = arith.constant 0 : index
    %26 = vector.load %arg3[%c0_10, %c0_11] : memref<8x1xf32, #tpu.memory_space<vmem>>, vector<8x1xf32>
    %27 = vector.broadcast %26 : vector<8x1xf32> to vector<8x256xf32>
    %28 = arith.addf %25, %27 : vector<8x256xf32>
    %cst_12 = arith.constant 0.000000e+00 : f32
    %29 = vector.broadcast %cst_12 : f32 to vector<8x256xf32>
    %30 = arith.maximumf %28, %29 : vector<8x256xf32>
    %cst_13 = arith.constant 0.000000e+00 : f32
    %31 = vector.broadcast %cst_13 : f32 to vector<8x128xf32>
    %c0_14 = arith.constant 0 : index
    %c0_15 = arith.constant 0 : index
    %32 = vector.load %arg8[%c0_14, %c0_15] : memref<8x512xf32, #tpu.memory_space<vmem>>, vector<8x128xf32>
    tpu.vector_store %arg8[%c0_14, %c0_15], %31 {strides = array<i32>} : memref<8x512xf32, #tpu.memory_space<vmem>>, vector<8x128xf32>,
    %cst_16 = arith.constant 0.000000e+00 : f32
    %33 = vector.broadcast %cst_16 : f32 to vector<8x128xf32>
    %c0_17 = arith.constant 0 : index
    %c384 = arith.constant 384 : index
    %34 = vector.load %arg8[%c0_17, %c384] : memref<8x512xf32, #tpu.memory_space<vmem>>, vector<8x128xf32>
    tpu.vector_store %arg8[%c0_17, %c384], %33 {strides = array<i32>} : memref<8x512xf32, #tpu.memory_space<vmem>>, vector<8x128xf32>,
    %c0_18 = arith.constant 0 : index
    %c128 = arith.constant 128 : index
    %35 = vector.load %arg8[%c0_18, %c128] : memref<8x512xf32, #tpu.memory_space<vmem>>, vector<8x256xf32>
    tpu.vector_store %arg8[%c0_18, %c128], %30 {strides = array<i32>} : memref<8x512xf32, #tpu.memory_space<vmem>>, vector<8x256xf32>,
    %c0_19 = arith.constant 0 : index
    %c0_20 = arith.constant 0 : index
    %36 = vector.load %arg8[%c0_19, %c0_20] : memref<8x512xf32, #tpu.memory_space<vmem>>, vector<8x512xf32>
    %37 = vector.extract_strided_slice %36 {offsets = [0, 111], sizes = [8, 256], strides = [1, 1]} : vector<8x512xf32> to vector<8x256xf32>
    %38 = arith.mulf %37, %3 : vector<8x256xf32>
    %39 = vector.extract_strided_slice %36 {offsets = [0, 112], sizes = [8, 256], strides = [1, 1]} : vector<8x512xf32> to vector<8x256xf32>
    %40 = vector.extract_strided_slice %36 {offsets = [0, 113], sizes = [8, 256], strides = [1, 1]} : vector<8x512xf32> to vector<8x256xf32>
    %41 = arith.mulf %40, %5 : vector<8x256xf32>
    %42 = vector.extract_strided_slice %36 {offsets = [0, 127], sizes = [8, 256], strides = [1, 1]} : vector<8x512xf32> to vector<8x256xf32>
    %43 = arith.mulf %42, %3 : vector<8x256xf32>
    %44 = vector.extract_strided_slice %36 {offsets = [0, 128], sizes = [8, 256], strides = [1, 1]} : vector<8x512xf32> to vector<8x256xf32>
    %45 = vector.extract_strided_slice %36 {offsets = [0, 129], sizes = [8, 256], strides = [1, 1]} : vector<8x512xf32> to vector<8x256xf32>
    %46 = arith.mulf %45, %5 : vector<8x256xf32>
    %47 = vector.extract_strided_slice %36 {offsets = [0, 143], sizes = [8, 256], strides = [1, 1]} : vector<8x512xf32> to vector<8x256xf32>
    %48 = arith.mulf %47, %3 : vector<8x256xf32>
    %49 = vector.extract_strided_slice %36 {offsets = [0, 144], sizes = [8, 256], strides = [1, 1]} : vector<8x512xf32> to vector<8x256xf32>
    %50 = vector.extract_strided_slice %36 {offsets = [0, 145], sizes = [8, 256], strides = [1, 1]} : vector<8x512xf32> to vector<8x256xf32>
    %51 = arith.mulf %50, %5 : vector<8x256xf32>
    %cst_21 = arith.constant 0.000000e+00 : f32
    %52 = vector.broadcast %cst_21 : f32 to vector<56x256xf32>
    %53 = tpu.concatenate %38, %39, %41, %43, %44, %46, %48, %49, %51, %52 in 0 : vector<8x256xf32>, vector<8x256xf32>, vector<8x256xf32>, vector<8x256xf32>, vector<8x256xf32>, vector<8x256xf32>, vector<8x256xf32>, vector<8x256xf32>, vector<8x256xf32>, vector<56x256xf32> -> vector<128x256xf32>
    %c0_22 = arith.constant 0 : index
    %c0_23 = arith.constant 0 : index
    %54 = vector.load %arg4[%c0_22, %c0_23] : memref<8x128xf32, #tpu.memory_space<vmem>>, vector<8x128xf32>
    %cst_24 = arith.constant dense<0.000000e+00> : vector<8x256xf32>
    %55 = tpu.matmul %54, %53, %cst_24 {dimension_numbers = #tpu.dot_dimension_numbers<[1], [0], [0], [1], [0, 0, 1, 1], [], []>} : vector<8x128xf32>, vector<128x256xf32>, vector<8x256xf32> -> vector<8x256xf32>
    %c0_25 = arith.constant 0 : index
    %c0_26 = arith.constant 0 : index
    %56 = vector.load %arg5[%c0_25, %c0_26] : memref<8x1xf32, #tpu.memory_space<vmem>>, vector<8x1xf32>
    %57 = vector.broadcast %56 : vector<8x1xf32> to vector<8x256xf32>
    %58 = arith.addf %55, %57 : vector<8x256xf32>
    %cst_27 = arith.constant 0.000000e+00 : f32
    %59 = vector.broadcast %cst_27 : f32 to vector<8x256xf32>
    %60 = arith.maximumf %58, %59 : vector<8x256xf32>
    %c0_28 = arith.constant 0 : index
    %c0_29 = arith.constant 0 : index
    %c0_30 = arith.constant 0 : index
    %61 = vector.load %arg7[%c0_28, %c0_29, %c0_30] : memref<1x8x256xf32, #tpu.memory_space<vmem>>, vector<1x8x256xf32>
    %62 = vector.shape_cast %61 : vector<1x8x256xf32> to vector<8x256xf32>
    %63 = vector.shape_cast %60 : vector<8x256xf32> to vector<1x8x256xf32>
    tpu.vector_store %arg7[%c0_28, %c0_29, %c0_30], %63 {strides = array<i32>} : memref<1x8x256xf32, #tpu.memory_space<vmem>>, vector<1x8x256xf32>,
    return
  }
  func.func @transform_0(%arg0: i32) -> (i32, i32, i32) {
    %c0_i32 = arith.constant 0 : i32
    %c0_i32_0 = arith.constant 0 : i32
    %c0_i32_1 = arith.constant 0 : i32
    return %arg0, %c0_i32, %c0_i32_0 : i32, i32, i32
  }
  func.func @transform_1(%arg0: i32) -> (i32, i32) {
    %c0_i32 = arith.constant 0 : i32
    %c0_i32_0 = arith.constant 0 : i32
    %c0_i32_1 = arith.constant 0 : i32
    return %c0_i32, %c0_i32_0 : i32, i32
  }
  func.func @transform_2(%arg0: i32) -> (i32, i32) {
    %c0_i32 = arith.constant 0 : i32
    %c0_i32_0 = arith.constant 0 : i32
    %c0_i32_1 = arith.constant 0 : i32
    return %c0_i32, %c0_i32_0 : i32, i32
  }
  func.func @transform_3(%arg0: i32) -> (i32, i32) {
    %c0_i32 = arith.constant 0 : i32
    %c0_i32_0 = arith.constant 0 : i32
    %c0_i32_1 = arith.constant 0 : i32
    return %c0_i32, %c0_i32_0 : i32, i32
  }
  func.func @transform_4(%arg0: i32) -> (i32, i32) {
    %c0_i32 = arith.constant 0 : i32
    %c0_i32_0 = arith.constant 0 : i32
    %c0_i32_1 = arith.constant 0 : i32
    return %c0_i32, %c0_i32_0 : i32, i32
  }
  func.func @transform_5(%arg0: i32) -> (i32, i32, i32) {
    %c0_i32 = arith.constant 0 : i32
    %c0_i32_0 = arith.constant 0 : i32
    %c0_i32_1 = arith.constant 0 : i32
    %c0_i32_2 = arith.constant 0 : i32
    return %c0_i32, %c0_i32_0, %c0_i32_1 : i32, i32, i32
  }
  func.func @transform_6(%arg0: i32) -> (i32, i32, i32) {
    %c0_i32 = arith.constant 0 : i32
    %c0_i32_0 = arith.constant 0 : i32
    %c0_i32_1 = arith.constant 0 : i32
    return %arg0, %c0_i32, %c0_i32_0 : i32, i32, i32
  }
}

</mosaic_0001>

<bundles_post_ra>
// kernel: forward.1
= control target key start
LH: loop header
LB: loop body
LE: loop exit
PB: predicated region body
PF: predicated region fallthrough
CT: control target
= control target key end

     0   :  { %s1125_s21 = smov 0   ;;  %s1430_s0 = inlined_call_operand.vmem [shape: f32[2,8,512], index: 0, kind: input, shape index: {}]   ;;  %s1431_s1 = inlined_call_operand.vmem [shape: bf16[8,128], index: 1, kind: input, shape index: {}]   ;;  %s1432_s2 = inlined_call_operand.vmem [shape: f32[8,1], index: 2, kind: input, shape index: {}]   ;;  %s1433_s3 = inlined_call_operand.vmem [shape: f32[8,128], index: 3, kind: input, shape index: {}]   ;;  %s1434_s4 = inlined_call_operand.vmem [shape: f32[8,1], index: 4, kind: input, shape index: {}]   ;;  %s1435_s5 = inlined_call_operand.vmem [shape: f32[2,8,256], index: 5, kind: input, shape index: {}]   ;;  %s1436_s6 = inlined_call_operand.vmem [shape: f32[2,8,256], index: 6, kind: output, shape index: {}]  }
   0x1 LB: > { %s877_s22 = sadd.s32 4294967295, %s1073_s21   ;;  %p881_p0 = scmp.ge.s32.totalorder %s1073_s21, 1  ;;  %s1073_s21 = sphi %s1125_s21, %s16_s21  }
   0x2   : > { %p212_p1 = scmp.lt.s32.totalorder %s1073_s21, 3 }
   0x4   : > { %p213_p2 = pnand %p881_p0, %p212_p1 }
   0x5   : > { %s1075_s27 = smov (!%p213_p2), 17   ;;  %s1076_s28 = smov (!%p213_p2), 15  }
   0x6   : > { %216 = sbr.rel (%p213_p2) target bundleno = 980 (0x3d4), region = 44  ;;  %s1077_s29 = smov (!%p213_p2), 1  }
   0x7   : > { %p242_p3 = scmp.lt.s32.totalorder (!%p213_p2), %s877_s22, 1  ;;  %s1078_s10 = smov (!%p213_p2), 113  }
   0x8   : > { %s1079_s11 = smov (!%p213_p2), 127   ;;  %s1080_s16 = smov (!%p213_p2), 95  }
   0x9   : > { %s1081_s17 = smov (!%p213_p2), 111   ;;  %s1082_s18 = smov (!%p213_p2), 110  }
   0xa   : > { %s1083_s19 = smov (!%p213_p2), 94   ;;  %s1084_s20 = smov (!%p213_p2), 96  }
   0xb   : > { %v886_v0 = vld [vmem:[%s1435_s5 + $0x10] sm:$0xff]  ;;  %v256_v1 = vld [vmem:[%s1435_s5] sm:$0xff]  ;;  %v887_v2 = vld [vmem:[%s1435_s5 + $0x18] sm:$0xff]  ;;  %s1438_s22 = smov (!%p242_p3, %s877_s22), 1  ;;  %vm317_vm0 = vcmask 121856   ;;  %vm305_vm1 = vcmask 7168  }
   0xc   : > { %325 = vrot.lane.b32.xlu0 %v886_v0, %s1075_s27  ;;  %313 = vrot.lane.b32.xlu1 %v256_v1, %s1076_s28  ;;  %v257_v3 = vld [vmem:[%s1435_s5 + $0x8] sm:$0xff]  ;;  %s890_s12 = sshll.u32 %s1438_s22, 5  ;;  %s1085_s23 = smov 126   ;;  %vm293_vm2 = vcmask 1039360   ;;  %vm329_vm3 = vcmask 138240   ;;  %vm281_vm4 = vcmask 924672  }
   0xd   : > { %301 = vrot.lane.b32.xlu2 %v886_v0, %s1077_s29  ;;  %s1155_s15 = scalar_lea.vmem %s1430_s0, %s890_s12  ;;  %s1086_s24 = smov 112   ;;  %v1087_v45 = vmov 0.0|0.0   ;;  %vm441_vm5 = vcmask 769024   ;;  %vm426_vm6 = vcmask 777216   ;;  %vm413_vm7 = vcmask 785408  }
   0xe   : > { %v255_v4 = vld [vmem:[%s1155_s15 + $0x18] sm:$0xff]  ;;  %v1161_v5 = vld [vmem:[%s1155_s15 + $0x8] sm:$0xff]  ;;  %v1164_v6 = vld [vmem:[%s1155_s15 + $0x10] sm:$0xff]  ;;  %vm267_vm8 = vcmask 908288   ;;  %vm398_vm9 = vcmask 900096   ;;  %vm360_vm10 = vcmask 1031168  }
   0xf   : > { %v915_v7 = vpack.i.bf16 %v1164_v6, %v1161_v5  ;;  %v1216_v28 = vld [vmem:[%s1155_s15] sm:$0xff]  ;;  %vm375_vm11 = vcmask 916480   ;;  %s891_s9 = sshll.u32 %s1438_s22, 4 }
  0x10   : > { %v945_v44 = vpack.i.bf16 %v1161_v5, %v1216_v28  ;;  %s251_s12 = scalar_lea.vmem %s1436_s6, %s891_s9 }
  0x14   : > { %327 = vrot.lane.b32.xlu0 %v887_v2, %s1075_s27  ;;  %315 = vrot.lane.b32.xlu1 %v257_v3, %s1076_s28 }
  0x15   : > { %303 = vrot.lane.b32.xlu2 %v887_v2, %s1077_s29 }
  0x1c   : > { %277 = vrot.lane.b32.xlu0 %v886_v0, %s1078_s10  ;;  %279 = vrot.lane.b32.xlu1 %v887_v2, %s1078_s10 }
  0x1d   : > { %289 = vrot.lane.b32.xlu2 %v256_v1, %s1079_s11 }
  0x24   : > { %291 = vrot.lane.b32.xlu0 %v257_v3, %s1079_s11  ;;  %921 = vrot.lane.b32.xlu1 %v915_v7, %s1081_s17 }
  0x25   : > { %916 = vrot.lane.b32.xlu2 %v915_v7, %s1080_s16 }
  0x2c   : > { %424 = vrot.lane.b32.xlu0 %v255_v4, %s1080_s16 }
  0x2d   : > { %263 = vrot.lane.b32.xlu2 %v256_v1, %s1081_s17 }
  0x34   : > { %265 = vrot.lane.b32.xlu0 %v257_v3, %s1081_s17 }
  0x67   : > { %v1171_v8 = vpop.permute.xlu2 %301 }
  0x68   : > { %v310_v25 = vmul.f32 %v1171_v8, %v1161_v5 }
  0x6f   : > { %v1173_v9 = vpop.permute.xlu2 %303 }
  0x70   : > { %v312_v10 = vmul.f32 %v1173_v9, %v255_v4  ;;  %v1200_v21 = vsel %vm305_vm1, %v1171_v8, %v1173_v9 }
  0x71   : > { %v311_v26 = vmul.f32 %v1200_v21, %v1164_v6 }
  0x72   : > { %396 = vrot.lane.b32.xlu0 %v312_v10, %s1082_s18  ;;  %v1088_v10 = vmov 0  }
  0x73   : > { %v935_v29 = vpack.i.bf16 %v311_v26, %v310_v25  ;;  %955 = vset.pattern.permute.xlu1 %v1088_v10  ;;  %1066 = vset.pattern.permute.xlu0 %v1088_v10  ;;  %v464_v10 = vld [vmem:[%s1432_s2] sm:$0xff] }
  0x77   : > { %v1213_v27 = vpop.permute.xlu2 %289 }
  0x78   : > { %v298_v31 = vmul.f32 %v1213_v27, %v1216_v28 }
  0x7e   : > { %v1177_v11 = vpop.permute.xlu0 %325  ;;  %v1179_v12 = vpop.permute.xlu1 %313 }
  0x7f   : > { %v322_v13 = vmul.f32 %v1179_v12, %v1161_v5  ;;  %v334_v38 = vmul.f32 %v1177_v11, %v1161_v5  ;;  %v917_v46 = vpop.permute.xlu2 %916 }
  0x80   : > { %v919_v2 = vunpack.i.h.bf16 %v917_v46  ;;  %v918_v3 = vunpack.i.l.bf16 %v917_v46 }
  0x86   : > { %v1183_v14 = vpop.permute.xlu0 %327  ;;  %v1185_v15 = vpop.permute.xlu1 %315 }
  0x87   : > { %v336_v16 = vmul.f32 %v1183_v14, %v255_v4  ;;  %v1190_v17 = vsel %vm317_vm0, %v1179_v12, %v1185_v15  ;;  %v324_v19 = vmul.f32 %v1185_v15, %v255_v4  ;;  %v1232_v34 = vsel %vm329_vm3, %v1177_v11, %v1183_v14  ;;  %v1259_v48 = vpop.permute.xlu2 %263 }
  0x88   : > { %v323_v18 = vmul.f32 %v1190_v17, %v1164_v6  ;;  %v335_v37 = vmul.f32 %v1232_v34, %v1164_v6 }
  0x89   : > { %439 = vrot.lane.b32.xlu2 %v336_v16, %s1083_s19  ;;  %411 = vrot.lane.b32.xlu1 %v324_v19, %s1084_s20  ;;  %v427_v19 = vsel %vm426_vm6, %v918_v3, %v919_v2 }
  0x8a   : > { %v930_v20 = vpack.i.bf16 %v323_v18, %v322_v13  ;;  %v925_v39 = vpack.i.bf16 %v335_v37, %v334_v38 }
  0x8c   : > { %931 = vrot.lane.b32.xlu0 %v930_v20, %s1084_s20 }
  0x8e   : > { %v1202_v22 = vpop.permute.xlu0 %277  ;;  %v1204_v23 = vpop.permute.xlu1 %279 }
  0x8f   : > { %v288_v24 = vmul.f32 %v1204_v23, %v1164_v6  ;;  %v1245_v40 = vsel %vm281_vm4, %v1202_v22, %v1204_v23  ;;  %v286_v41 = vmul.f32 %v1202_v22, %v1216_v28 }
  0x90   : > { %v287_v42 = vmul.f32 %v1245_v40, %v1161_v5 }
  0x91   : > { %358 = vrot.lane.b32.xlu2 %v288_v24, %s1085_s23 }
  0x92   : > { %v940_v43 = vpack.i.bf16 %v287_v42, %v286_v41 }
  0x96   : > { %v1218_v30 = vpop.permute.xlu0 %291  ;;  %v922_v49 = vpop.permute.xlu1 %921 }
  0x97   : > { %v300_v32 = vmul.f32 %v1218_v30, %v1164_v6  ;;  %v1227_v33 = vsel %vm293_vm2, %v1213_v27, %v1218_v30 }
  0x98   : > { %v299_v35 = vmul.f32 %v1227_v33, %v1161_v5 }
  0x99   : > { %373 = vrot.lane.b32.xlu1 %v300_v32, %s1086_s24  ;;  %936 = vrot.lane.b32.xlu2 %v935_v29, %s1082_s18  ;;  %v924_v29 = vunpack.i.h.bf16 %v922_v49 }
  0x9a   : > { %v950_v36 = vpack.i.bf16 %v299_v35, %v298_v31  ;;  %v923_v31 = vunpack.i.l.bf16 %v922_v49 }
  0x9c   : > { %951 = vrot.lane.b32.xlu0 %v950_v36, %s1086_s24  ;;  %v385_v38 = vsel %vm267_vm8, %v923_v31, %v924_v29 }
  0x9e   : > { %v425_v47 = vpop.permute.xlu0 %424 }
  0x9f   : > { %v428_v13 = vsel %vm426_vm6, %v919_v2, %v425_v47 }
  0xa1   : > { %926 = vrot.lane.b32.xlu1 %v925_v39, %s1083_s19  ;;  %344 = vrot.lane.b32.xlu2 %v1164_v6, %s1079_s11 }
  0xa4   : > { %516 = vrot.lane.b32.xlu0 %v1087_v45, %s1075_s27 }
  0xa6   : > { %v1261_v50 = vpop.permute.xlu0 %265 }
  0xa9   : > { %941 = vrot.lane.b32.xlu1 %v940_v43, %s1085_s23 }
  0xb1   : > { %946 = vrot.lane.b32.xlu1 %v945_v44, %s1079_s11 }
  0xe3   : > { %v440_v51 = vpop.permute.xlu2 %439 }
  0xe4   : > { %v397_v53 = vpop.permute.xlu0 %396 }
  0xeb   : > { %v1263_v54 = vpop.permute.xlu2 %358 }
  0xf3   : > { %v937_v20 = vpop.permute.xlu2 %936 }
  0xf4   : > { %v939_v32 = vunpack.i.h.bf16 %v937_v20  ;;  %v938_v35 = vunpack.i.l.bf16 %v937_v20 }
  0xf6   : > { %v400_v37 = vsel %vm398_vm9, %v939_v32, %v397_v53  ;;  %v399_v39 = vsel %vm398_vm9, %v938_v35, %v939_v32  ;;  %v453_v41 = vpack.c.bf16 %v938_v35, %v923_v31 }
  0xf7   : > { %v455_v43 = vpack.c.bf16 %v400_v37, %v924_v29  ;;  %v454_v46 = vpack.c.bf16 %v399_v39, %v385_v38 }
  0xfb   : > { %v412_v52 = vpop.permute.xlu1 %411  ;;  %v345_v53 = vpop.permute.xlu2 %344 }
  0xfe   : > { %v932_v60 = vpop.permute.xlu0 %931 }
  0xff   : > { %v934_v4 = vunpack.i.h.bf16 %v932_v60  ;;  %v933_v7 = vunpack.i.l.bf16 %v932_v60 }
 0x101   : > { %v415_v16 = vsel %vm413_vm7, %v934_v4, %v412_v52  ;;  %v414_v18 = vsel %vm413_vm7, %v933_v7, %v934_v4  ;;  %v456_v24 = vpack.c.bf16 %v918_v3, %v933_v7  ;;  %v593_v4 = vmul.f32 0.0, %v1183_v14 }
 0x102   : > { %v458_v25 = vpack.c.bf16 %v428_v13, %v415_v16  ;;  %v457_v26 = vpack.c.bf16 %v427_v19, %v414_v18 }
 0x10b   : > { %v1265_v55 = vpop.permute.xlu1 %373 }
 0x10c   : > { %v452_v56 = vpack.c.bf16 %v1265_v55, %v1263_v54 }
 0x10e   : > { %496 = vrot.lane.b32.xlu0 %v452_v56, %s1075_s27  ;;  %v952_v42 = vpop.permute.xlu0 %951 }
 0x10f   : > { %v954_v47 = vunpack.i.h.bf16 %v952_v42  ;;  %v953_v49 = vunpack.i.l.bf16 %v952_v42 }
 0x111   : > { %v377_v60 = vsel %vm375_vm11, %v954_v47, %v1265_v55  ;;  %v272_v55 = vmul.f32 %v1259_v48, %v1216_v28  ;;  %v587_v28 = vmul.f32 0.0, %v1173_v9 }
 0x113   : > { %v927_v57 = vpop.permute.xlu1 %926 }
 0x114   : > { %v929_v58 = vunpack.i.h.bf16 %v927_v57  ;;  %v928_v59 = vunpack.i.l.bf16 %v927_v57 }
 0x116   : > { %v459_v61 = vpack.c.bf16 0.0, %v928_v59  ;;  %v442_v62 = vsel %vm441_vm5, %v928_v59, %v929_v58  ;;  %v443_v63 = vsel %vm441_vm5, %v929_v58, %v440_v51  ;;  %v274_v51 = vmul.f32 %v1261_v50, %v1164_v6  ;;  %v517_v14 = vpop.permute.xlu0 %516 }
 0x117   : > { %v460_v0 = vpack.c.bf16 0.0, %v442_v62  ;;  %v461_v1 = vpack.c.bf16 0.0, %v443_v63  ;;  %v376_v58 = vsel %vm375_vm11, %v953_v49, %v954_v47  ;;  %v1302_v6 = vsel %vm267_vm8, %v1259_v48, %v1261_v50  ;;  %540 = vmatpush.bf16.msra.mxu0 %v517_v14  ;;  %553 = vmatpush.bf16.msra.mxu1 %v517_v14 }
 0x118   : > { %510 = vrot.lane.b32.xlu1 %v459_v61, %s1075_s27  ;;  %v449_v61 = vpack.c.bf16 %v345_v53, %v274_v51  ;;  %v273_v2 = vmul.f32 %v1302_v6, %v1161_v5  ;;  %v590_v5 = vmul.f32 0.0, %v1185_v15  ;;  %v1089_v51 = vmov 0.0  }
 0x119   : > { %512 = vrot.lane.b32.xlu2 %v460_v0, %s1075_s27  ;;  %514 = vrot.lane.b32.xlu0 %v461_v1, %s1075_s27 }
 0x11b   : > { %v942_v36 = vpop.permute.xlu1 %941  ;;  %541 = vmatpush.bf16.msra.mxu0 %v517_v14  ;;  %554 = vmatpush.bf16.msra.mxu1 %v517_v14 }
 0x11c   : > { %v944_v44 = vunpack.i.h.bf16 %v942_v36  ;;  %v943_v45 = vunpack.i.l.bf16 %v942_v36 }
 0x11e   : > { %v361_v52 = vsel %vm360_vm10, %v943_v45, %v944_v44  ;;  %v362_v57 = vsel %vm360_vm10, %v944_v44, %v1263_v54 }
 0x11f   : > { %v450_v59 = vpack.c.bf16 %v376_v58, %v361_v52  ;;  %v451_v0 = vpack.c.bf16 %v377_v60, %v362_v57  ;;  %542 = vmatpush.bf16.msra.mxu0 %v517_v14  ;;  %555 = vmatpush.bf16.msra.mxu1 %v517_v14 }
 0x120   : > { %504 = vrot.lane.b32.xlu1 %v456_v24, %s1075_s27 }
 0x121   : > { %506 = vrot.lane.b32.xlu2 %v457_v26, %s1075_s27  ;;  %508 = vrot.lane.b32.xlu0 %v458_v25, %s1075_s27 }
 0x123   : > { %v947_v56 = vpop.permute.xlu1 %946 }
 0x124   : > { %v949_v62 = vunpack.i.h.bf16 %v947_v56  ;;  %v948_v63 = vunpack.i.l.bf16 %v947_v56 }
 0x126   : > { %v346_v54 = vsel %vm293_vm2, %v948_v63, %v949_v62  ;;  %v347_v1 = vsel %vm293_vm2, %v949_v62, %v345_v53 }
 0x127   : > { %v447_v3 = vpack.c.bf16 %v346_v54, %v272_v55  ;;  %v448_v7 = vpack.c.bf16 %v347_v1, %v273_v2 }
 0x128   : > { %498 = vrot.lane.b32.xlu1 %v453_v41, %s1075_s27 }
 0x129   : > { %500 = vrot.lane.b32.xlu2 %v454_v46, %s1075_s27  ;;  %502 = vrot.lane.b32.xlu0 %v455_v43, %s1075_s27  ;;  %v463_v46 = vld [vmem:[%s1431_s1] sm:$0xf] }
 0x130   : > { %492 = vrot.lane.b32.xlu1 %v450_v59, %s1075_s27 }
 0x131   : > { %490 = vrot.lane.b32.xlu0 %v449_v61, %s1075_s27  ;;  %494 = vrot.lane.b32.xlu2 %v451_v0, %s1075_s27 }
 0x138   : > { %486 = vrot.lane.b32.xlu1 %v447_v3, %s1075_s27 }
 0x139   : > { %670 = vrot.lane.b32.xlu0 %v593_v4, %s1083_s19  ;;  %488 = vrot.lane.b32.xlu2 %v448_v7, %s1075_s27 }
 0x140   : > { %467 = vperm.xlu1 %955, %v464_v10   ;;  %v579_v10 = vmul.f32 0.0, %v1202_v22 }
 0x141   : > { %639 = vrot.lane.b32.xlu0 %v587_v28, %s1082_s18  ;;  %659 = vrot.lane.b32.xlu2 %v1089_v51, %s1080_s16 }
 0x148   : > { %650 = vrot.lane.b32.xlu1 %v590_v5, %s1084_s20  ;;  %v582_v5 = vmul.f32 0.0, %v1213_v27 }
 0x173   : > { %v513_v13 = vpop.permute.xlu2 %512 }
 0x17b   : > { %v507_v18 = vpop.permute.xlu2 %506 }
 0x180   : > { %v497_v16 = vpop.permute.xlu0 %496 }
 0x183   : > { %v501_v15 = vpop.permute.xlu2 %500 }
 0x18a   : > { %v511_v19 = vpop.permute.xlu1 %510 }
 0x18b   : > { %v515_v20 = vpop.permute.xlu0 %514  ;;  %v527_v9 = vsel %vm329_vm3, %v511_v19, %v513_v13  ;;  %v495_v32 = vpop.permute.xlu2 %494 }
 0x18c   : > { %543 = vmatpush.bf16.msra.mxu0 %v527_v9  ;;  %v528_v24 = vsel %vm329_vm3, %v513_v13, %v515_v20  ;;  %v522_v39 = vsel %vm329_vm3, %v495_v32, %v497_v16 }
 0x18d   : > { %556 = vmatpush.bf16.msra.mxu1 %v528_v24 }
 0x192   : > { %v505_v25 = vpop.permute.xlu1 %504 }
 0x193   : > { %v509_v26 = vpop.permute.xlu0 %508  ;;  %v525_v29 = vsel %vm329_vm3, %v505_v25, %v507_v18  ;;  %v489_v42 = vpop.permute.xlu2 %488 }
 0x194   : > { %544 = vmatpush.bf16.msra.mxu0 %v525_v29  ;;  %v526_v31 = vsel %vm329_vm3, %v507_v18, %v509_v26 }
 0x195   : > { %557 = vmatpush.bf16.msra.mxu1 %v526_v31 }
 0x19a   : > { %v499_v35 = vpop.permute.xlu1 %498 }
 0x19b   : > { %v503_v36 = vpop.permute.xlu0 %502  ;;  %v523_v37 = vsel %vm329_vm3, %v499_v35, %v501_v15  ;;  %v660_v22 = vpop.permute.xlu2 %659 }
 0x19c   : > { %545 = vmatpush.bf16.msra.mxu0 %v523_v37  ;;  %v524_v38 = vsel %vm329_vm3, %v501_v15, %v503_v36 }
 0x19d   : > { %558 = vmatpush.bf16.msra.mxu1 %v524_v38 }
 0x1a1   : > { %559 = vmatpush.bf16.msra.mxu1 %v522_v39 }
 0x1a2   : > { %v493_v41 = vpop.permute.xlu1 %492 }
 0x1a3   : > { %v491_v43 = vpop.permute.xlu0 %490  ;;  %v521_v44 = vsel %vm329_vm3, %v493_v41, %v495_v32 }
 0x1a4   : > { %546 = vmatpush.bf16.msra.mxu0 %v521_v44  ;;  %v520_v45 = vsel %vm329_vm3, %v489_v42, %v491_v43 }
 0x1a5   : > { %560 = vmatpush.bf16.msra.mxu1 %v520_v45 }
 0x1a8   : > { %561 = vmatmul.bf16.vlgmr.msra.gmra.mxu1 %v463_v46 }
 0x1aa   : > { %v487_v47 = vpop.permute.xlu1 %486 }
 0x1ab   : > { %v519_v49 = vsel %vm329_vm3, %v487_v47, %v489_v42  ;;  %v671_v27 = vpop.permute.xlu0 %670 }
 0x1ac   : > { %547 = vmatpush.bf16.msra.mxu0 %v519_v49 }
 0x1af   : > { %548 = vmatmul.bf16.vlgmr.msra.gmra.mxu0 %v463_v46 }
 0x1b2   : > { %v468_v53 = vpop.permute.xlu1 %467 }
 0x1b3   : > { %v640_v18 = vpop.permute.xlu0 %639 }
 0x1ba   : > { %v651_v16 = vpop.permute.xlu1 %650 }
 0x225   : > { %v562_v52 = vpop.f32.mrf.mxu1 }
 0x226   : > { %v563_v56 = vadd.f32 %v562_v52, %v468_v53 }
 0x228   : > { %v567_v57 = vmax.f32 %v563_v56, 0.0 }
 0x22a   : > { %v592_v62 = vmul.f32 %v567_v57, %v1232_v34  ;;  %v589_v55 = vmul.f32 %v567_v57, %v1190_v17  ;;  %v1344_v4 = vmul.f32 %v567_v57, %v1261_v50  ;;  %v586_v17 = vmul.f32 %v567_v57, %v1200_v21 }
 0x22b   : > { %v584_v34 = vmul.f32 %v567_v57, %v1218_v30  ;;  %v581_v30 = vmul.f32 %v567_v57, %v1204_v23 }
 0x22c   : > { %v549_v58 = vpop.f32.mrf.mxu0 }
 0x22d   : > { %v550_v59 = vadd.f32 %v549_v58, %v468_v53  ;;  %v564_v60 = vpop.f32.mrf.mxu1 }
 0x22f   : > { %v566_v61 = vmax.f32 %v550_v59, 0.0 }
 0x231   : > { %v956_v63 = vpack.i.bf16 %v567_v57, %v566_v61  ;;  %v591_v0 = vmul.f32 %v566_v61, %v1177_v11  ;;  %v588_v54 = vmul.f32 %v566_v61, %v1179_v12  ;;  %v1341_v3 = vmul.f32 %v566_v61, %v1302_v6 }
 0x232   : > { %v585_v12 = vmul.f32 %v566_v61, %v1171_v8  ;;  %v580_v50 = vmul.f32 %v566_v61, %v1245_v40  ;;  %v583_v28 = vmul.f32 %v566_v61, %v1227_v33  ;;  %v991_v21 = vpack.i.bf16 %v566_v61, %v1089_v51 }
 0x233   : > { %957 = vrot.lane.b32.xlu1 %v956_v63, %s1080_s16  ;;  %v966_v1 = vpack.i.bf16 %v592_v62, %v591_v0  ;;  %v971_v2 = vpack.i.bf16 %v589_v55, %v588_v54  ;;  %v1061_v11 = vpack.i.bf16 %v1344_v4, %v1341_v3 }
 0x234   : > { %v551_v7 = vpop.f32.mrf.mxu0  ;;  %v976_v6 = vpack.i.bf16 %v586_v17, %v585_v12  ;;  %v986_v8 = vpack.i.bf16 %v580_v50, %v579_v10  ;;  %v981_v14 = vpack.i.bf16 %v583_v28, %v582_v5  ;;  %v576_v50 = vmul.f32 0.0, %v1259_v48 }
 0x235   : > { %967 = vrot.lane.b32.xlu2 %v966_v1, %s1083_s19  ;;  %972 = vrot.lane.b32.xlu0 %v971_v2, %s1084_s20 }
 0x23b   : > { %962 = vrot.lane.b32.xlu1 %v956_v63, %s1081_s17 }
 0x23d   : > { %623 = vrot.lane.b32.xlu0 %v584_v34, %s1086_s24  ;;  %977 = vrot.lane.b32.xlu2 %v976_v6, %s1082_s18 }
 0x243   : > { %987 = vrot.lane.b32.xlu1 %v986_v8, %s1085_s23 }
 0x245   : > { %992 = vrot.lane.b32.xlu0 %v991_v21, %s1079_s11  ;;  %982 = vrot.lane.b32.xlu2 %v981_v14, %s1086_s24 }
 0x24b   : > { %601 = vrot.lane.b32.xlu1 %v567_v57, %s1079_s11 }
 0x24d   : > { %612 = vrot.lane.b32.xlu2 %v581_v30, %s1085_s23  ;;  %v675_v30 = vld [vmem:[%s1434_s4] sm:$0xff] }
 0x28f   : > { %v968_v40 = vpop.permute.xlu2 %967 }
 0x290   : > { %v969_v33 = vunpack.i.l.bf16 %v968_v40  ;;  %v970_v43 = vunpack.i.h.bf16 %v968_v40 }
 0x292   : > { %v1006_v13 = vpack.i.bf16 %v969_v33, %v1089_v51  ;;  %v672_v56 = vsel %vm441_vm5, %v969_v33, %v970_v43  ;;  %v673_v60 = vsel %vm441_vm5, %v970_v43, %v671_v27 }
 0x293   : > { %v1016_v54 = vpack.i.bf16 %v673_v60, %v672_v56 }
 0x294   : > { %1007 = vrot.lane.b32.xlu2 %v1006_v13, %s1075_s27 }
 0x297   : > { %v978_v24 = vpop.permute.xlu2 %977 }
 0x298   : > { %v980_v31 = vunpack.i.h.bf16 %v978_v24  ;;  %v979_v32 = vunpack.i.l.bf16 %v978_v24 }
 0x29a   : > { %v641_v37 = vsel %vm398_vm9, %v979_v32, %v980_v31  ;;  %v642_v46 = vsel %vm398_vm9, %v980_v31, %v640_v18 }
 0x29b   : > { %v1026_v44 = vpack.i.bf16 %v641_v37, %v979_v32 }
 0x29f   : > { %v983_v45 = vpop.permute.xlu2 %982 }
 0x2a0   : > { %v985_v51 = vunpack.i.h.bf16 %v983_v45  ;;  %v984_v52 = vunpack.i.l.bf16 %v983_v45 }
 0x2a2   : > { %v625_v61 = vsel %vm375_vm11, %v984_v52, %v985_v51 }
 0x2a5   : > { %v958_v19 = vpop.permute.xlu1 %957 }
 0x2a6   : > { %v960_v20 = vunpack.i.h.bf16 %v958_v19  ;;  %v959_v9 = vunpack.i.l.bf16 %v958_v19 }
 0x2a7   : > { %v973_v15 = vpop.permute.xlu0 %972  ;;  %v613_v21 = vpop.permute.xlu2 %612 }
 0x2a8   : > { %v661_v25 = vsel %vm426_vm6, %v959_v9, %v960_v20  ;;  %v974_v26 = vunpack.i.l.bf16 %v973_v15  ;;  %v662_v23 = vsel %vm426_vm6, %v960_v20, %v660_v22  ;;  %v975_v1 = vunpack.i.h.bf16 %v973_v15 }
 0x2a9   : > { %v996_v29 = vpack.i.bf16 %v661_v25, %v959_v9 }
 0x2aa   : > { %v1011_v35 = vpack.i.bf16 %v974_v26, %v662_v23  ;;  %v652_v34 = vsel %vm413_vm7, %v974_v26, %v975_v1  ;;  %v653_v6 = vsel %vm413_vm7, %v975_v1, %v651_v16 }
 0x2ab   : > { %997 = vrot.lane.b32.xlu1 %v996_v29, %s1075_s27  ;;  %v1021_v5 = vpack.i.bf16 %v653_v6, %v652_v34 }
 0x2ac   : > { %1012 = vrot.lane.b32.xlu2 %v1011_v35, %s1075_s27 }
 0x2ad   : > { %v963_v36 = vpop.permute.xlu1 %962 }
 0x2ae   : > { %v965_v38 = vunpack.i.h.bf16 %v963_v36  ;;  %v964_v39 = vunpack.i.l.bf16 %v963_v36 }
 0x2af   : > { %v624_v41 = vpop.permute.xlu0 %623 }
 0x2b0   : > { %v631_v42 = vsel %vm267_vm8, %v964_v39, %v965_v38  ;;  %v1031_v49 = vpack.i.bf16 %v964_v39, %v642_v46  ;;  %v626_v57 = vsel %vm375_vm11, %v985_v51, %v624_v41 }
 0x2b1   : > { %v1001_v47 = vpack.i.bf16 %v965_v38, %v631_v42  ;;  %v1036_v63 = vpack.i.bf16 %v626_v57, %v625_v61 }
 0x2b3   : > { %1002 = vrot.lane.b32.xlu0 %v1001_v47, %s1075_s27  ;;  %1027 = vrot.lane.b32.xlu1 %v1026_v44, %s1075_s27 }
 0x2b4   : > { %1032 = vrot.lane.b32.xlu2 %v1031_v49, %s1075_s27 }
 0x2b5   : > { %v988_v53 = vpop.permute.xlu1 %987 }
 0x2b6   : > { %v990_v58 = vunpack.i.h.bf16 %v988_v53  ;;  %v989_v59 = vunpack.i.l.bf16 %v988_v53 }
 0x2b7   : > { %v993_v0 = vpop.permute.xlu0 %992 }
 0x2b8   : > { %v614_v62 = vsel %vm360_vm10, %v989_v59, %v990_v58  ;;  %v995_v2 = vunpack.i.h.bf16 %v993_v0  ;;  %v994_v7 = vunpack.i.l.bf16 %v993_v0  ;;  %v615_v14 = vsel %vm360_vm10, %v990_v58, %v613_v21 }
 0x2b9   : > { %v1046_v55 = vpack.i.bf16 %v614_v62, %v624_v41  ;;  %v1051_v22 = vpack.i.bf16 %v613_v21, %v615_v14 }
 0x2ba   : > { %v603_v10 = vsel %vm293_vm2, %v994_v7, %v995_v2 }
 0x2bb   : > { %1017 = vrot.lane.b32.xlu0 %v1016_v54, %s1075_s27  ;;  %1037 = vrot.lane.b32.xlu1 %v1036_v63, %s1075_s27 }
 0x2bc   : > { %1047 = vrot.lane.b32.xlu2 %v1046_v55, %s1075_s27 }
 0x2bd   : > { %v602_v12 = vpop.permute.xlu1 %601 }
 0x2be   : > { %v604_v17 = vsel %vm293_vm2, %v995_v2, %v602_v12  ;;  %v1056_v8 = vpack.i.bf16 %v576_v50, %v602_v12 }
 0x2bf   : > { %v1041_v28 = vpack.i.bf16 %v604_v17, %v603_v10 }
 0x2c3   : > { %1022 = vrot.lane.b32.xlu0 %v1021_v5, %s1075_s27  ;;  %1042 = vrot.lane.b32.xlu1 %v1041_v28, %s1075_s27  ;;  %v674_v5 = vld [vmem:[%s1433_s3] sm:$0xff] }
 0x2c4   : > { %1057 = vrot.lane.b32.xlu2 %v1056_v8, %s1075_s27 }
 0x2cb   : > { %1052 = vrot.lane.b32.xlu0 %v1051_v22, %s1075_s27  ;;  %678 = vperm.xlu1 %955, %v675_v30  }
 0x2d3   : > { %1062 = vrot.lane.b32.xlu0 %v1061_v11, %s1075_s27 }
 0x2ee   : > { %v1008_v48 = vpop.permute.xlu2 %1007 }
 0x2ef   : > { %v1009_v40 = vunpack.i.l.bf16 %v1008_v48  ;;  %v1010_v27 = vunpack.i.h.bf16 %v1008_v48 }
 0x2f1   : > { %778 = vmatpush.msra.mxu2 %v1009_v40  ;;  %798 = vmatpush.msra.mxu3 %v1009_v40 }
 0x2f3   : > { %779 = vmatpush.msra.mxu2 %v1009_v40  ;;  %799 = vmatpush.msra.mxu3 %v1009_v40 }
 0x2f5   : > { %780 = vmatpush.msra.mxu2 %v1009_v40  ;;  %800 = vmatpush.msra.mxu3 %v1009_v40 }
 0x2f7   : > { %781 = vmatpush.msra.mxu2 %v1009_v40  ;;  %801 = vmatpush.msra.mxu3 %v1009_v40 }
 0x2f9   : > { %782 = vmatpush.msra.mxu2 %v1009_v40  ;;  %802 = vmatpush.msra.mxu3 %v1009_v40 }
 0x2fb   : > { %783 = vmatpush.msra.mxu2 %v1009_v40  ;;  %803 = vmatpush.msra.mxu3 %v1009_v40 }
 0x2fd   : > { %784 = vmatpush.msra.mxu2 %v1009_v40  ;;  %804 = vmatpush.msra.mxu3 %v1009_v40 }
 0x306   : > { %v1013_v13 = vpop.permute.xlu2 %1012 }
 0x307   : > { %v1014_v24 = vunpack.i.l.bf16 %v1013_v13  ;;  %v1015_v32 = vunpack.i.h.bf16 %v1013_v13 }
 0x30e   : > { %v1033_v11 = vpop.permute.xlu2 %1032 }
 0x30f   : > { %v1034_v41 = vunpack.i.l.bf16 %v1033_v11  ;;  %v1035_v49 = vunpack.i.h.bf16 %v1033_v11 }
 0x316   : > { %v1048_v31 = vpop.permute.xlu2 %1047 }
 0x317   : > { %v1049_v53 = vunpack.i.l.bf16 %v1048_v31  ;;  %v1050_v59 = vunpack.i.h.bf16 %v1048_v31 }
 0x31d   : > { %v998_v33 = vpop.permute.xlu1 %997 }
 0x31e   : > { %v1000_v18 = vunpack.i.h.bf16 %v998_v33  ;;  %v999_v19 = vunpack.i.l.bf16 %v998_v33  ;;  %v1058_v60 = vpop.permute.xlu2 %1057 }
 0x31f   : > { %v1059_v2 = vunpack.i.l.bf16 %v1058_v60  ;;  %v1060_v50 = vunpack.i.h.bf16 %v1058_v60 }
 0x320   : > { %v755_v23 = vsel %vm329_vm3, %v999_v19, %v1000_v18  ;;  %v756_v29 = vsel %vm329_vm3, %v1000_v18, %v1014_v24 }
 0x325   : > { %v1003_v3 = vpop.permute.xlu0 %1002  ;;  %v1028_v4 = vpop.permute.xlu1 %1027 }
 0x326   : > { %v1030_v36 = vunpack.i.h.bf16 %v1028_v4  ;;  %v1029_v37 = vunpack.i.l.bf16 %v1028_v4  ;;  %v1005_v42 = vunpack.i.h.bf16 %v1003_v3  ;;  %v1004_v43 = vunpack.i.l.bf16 %v1003_v3 }
 0x328   : > { %v751_v51 = vsel %vm329_vm3, %v1029_v37, %v1030_v36  ;;  %v752_v52 = vsel %vm329_vm3, %v1030_v36, %v1034_v41  ;;  %v749_v57 = vsel %vm329_vm3, %v1035_v49, %v1004_v43  ;;  %v750_v58 = vsel %vm329_vm3, %v1004_v43, %v1005_v42 }
 0x32d   : > { %v1018_v16 = vpop.permute.xlu0 %1017  ;;  %v1038_v26 = vpop.permute.xlu1 %1037 }
 0x32e   : > { %v1020_v20 = vunpack.i.h.bf16 %v1018_v16  ;;  %v1019_v9 = vunpack.i.l.bf16 %v1018_v16  ;;  %v1040_v46 = vunpack.i.h.bf16 %v1038_v26  ;;  %v1039_v47 = vunpack.i.l.bf16 %v1038_v26 }
 0x330   : > { %v757_v15 = vsel %vm329_vm3, %v1010_v27, %v1019_v9  ;;  %v758_v25 = vsel %vm329_vm3, %v1019_v9, %v1020_v20  ;;  %v747_v62 = vsel %vm329_vm3, %v1039_v47, %v1040_v46  ;;  %v748_v63 = vsel %vm329_vm3, %v1040_v46, %v1049_v53 }
 0x331   : > { %785 = vmatpush.msra.mxu2 %v757_v15  ;;  %805 = vmatpush.msra.mxu3 %v758_v25 }
 0x333   : > { %786 = vmatpush.msra.mxu2 %v755_v23  ;;  %806 = vmatpush.msra.mxu3 %v756_v29 }
 0x335   : > { %v1023_v35 = vpop.permute.xlu0 %1022  ;;  %v1043_v56 = vpop.permute.xlu1 %1042 }
 0x336   : > { %v1025_v38 = vunpack.i.h.bf16 %v1023_v35  ;;  %v1024_v39 = vunpack.i.l.bf16 %v1023_v35  ;;  %v1045_v0 = vunpack.i.h.bf16 %v1043_v56  ;;  %v1044_v54 = vunpack.i.l.bf16 %v1043_v56 }
 0x338   : > { %v753_v44 = vsel %vm329_vm3, %v1015_v32, %v1024_v39  ;;  %v754_v45 = vsel %vm329_vm3, %v1024_v39, %v1025_v38  ;;  %v743_v17 = vsel %vm329_vm3, %v1044_v54, %v1045_v0  ;;  %v744_v34 = vsel %vm329_vm3, %v1045_v0, %v1059_v2 }
 0x339   : > { %787 = vmatpush.msra.mxu2 %v753_v44  ;;  %807 = vmatpush.msra.mxu3 %v754_v45 }
 0x33b   : > { %788 = vmatpush.msra.mxu2 %v751_v51  ;;  %808 = vmatpush.msra.mxu3 %v752_v52 }
 0x33d   : > { %v1053_v61 = vpop.permute.xlu0 %1052  ;;  %789 = vmatpush.msra.mxu2 %v749_v57  ;;  %809 = vmatpush.msra.mxu3 %v750_v58  ;;  %v679_v14 = vpop.permute.xlu1 %678 }
 0x33e   : > { %v1055_v55 = vunpack.i.h.bf16 %v1053_v61  ;;  %v1054_v1 = vunpack.i.l.bf16 %v1053_v61 }
 0x33f   : > { %790 = vmatpush.msra.mxu2 %v747_v62  ;;  %810 = vmatpush.msra.mxu3 %v748_v63 }
 0x340   : > { %v745_v7 = vsel %vm329_vm3, %v1050_v59, %v1054_v1  ;;  %v746_v12 = vsel %vm329_vm3, %v1054_v1, %v1055_v55 }
 0x341   : > { %791 = vmatpush.msra.mxu2 %v745_v7  ;;  %811 = vmatpush.msra.mxu3 %v746_v12 }
 0x343   : > { %792 = vmatpush.msra.mxu2 %v743_v17  ;;  %812 = vmatpush.msra.mxu3 %v744_v34 }
 0x345   : > { %v1063_v6 = vpop.permute.xlu0 %1062 }
 0x346   : > { %v1065_v10 = vunpack.i.h.bf16 %v1063_v6  ;;  %v1064_v28 = vunpack.i.l.bf16 %v1063_v6 }
 0x348   : > { %v741_v8 = vsel %vm329_vm3, %v1060_v50, %v1064_v28  ;;  %v742_v21 = vsel %vm329_vm3, %v1064_v28, %v1065_v10 }
 0x349   : > { %793 = vmatpush.msra.mxu2 %v741_v8  ;;  %813 = vmatpush.msra.mxu3 %v742_v21 }
 0x34a   : > { %794 = vmatmul.f32.vlgmr.msra.gmra.mxu2 %v674_v5  ;;  %814 = vmatmul.f32.vlgmr.msra.gmra.mxu3 %v674_v5 }
 0x3cd   : > { %v795_v30 = vpop.f32.mrf.mxu2  ;;  %v815_v22 = vpop.f32.mrf.mxu3 }
 0x3ce   : > { %v796_v48 = vadd.f32 %v795_v30, %v679_v14  ;;  %v816_v40 = vadd.f32 %v815_v22, %v679_v14 }
 0x3d0   : > { %v818_v33 = vmax.f32 %v796_v48, 0.0  ;;  %v819_v13 = vmax.f32 %v816_v40, 0.0 }
 0x3d2   : > { %820 = vst [vmem:[%s251_s12] sm:$0xff] %v818_v33 }
 0x3d3   : > { %821 = vst [vmem:[%s251_s12 + $0x8] sm:$0xff] %v819_v13 }
 0x3d4 PF: > { %s16_s21 = sadd.s32 1, %s1073_s21  }
 0x3d5   : > { %p13_p4 = scmp.ge.s32.totalorder %s16_s21, 4  }
 0x3d7   :  { %15 = sbr.rel (!%p13_p4) target bundleno = 1 (0x1), region = 75 }

</bundles_post_ra>
